<compile_context>
chip_gen: v7x
topology: tpu7x:2x2x1
jax: 0.10.0
libtpu: 0.0.40
codegen_flags: <defaults>
</compile_context>

<pallas_src>
import functools

import jax
import jax.numpy as jnp
import numpy as np
from jax import lax
from jax.experimental import pallas as pl
from jax.experimental.pallas import tpu as pltpu

_EPS = 1e-5  # nn.BatchNorm2d default eps


def _round_up(a, b):
    return (a + b - 1) // b * b


def _make_kernel(W, l1p, lo_out, m, dot_dtype):
    Wp = W + 2
    offs = tuple(dy * Wp + dx for dy in range(3) for dx in range(3))  # tap k = dy*3 + dx

    def im2col(src, length):
        # stack the 9 lane-shifted slabs along the contracting (sublane) axis -> (9*NC, length)
        return jnp.concatenate([src[:, o:o + length] for o in offs], axis=0)

    def mxu_dot(w, cols):
        return jnp.dot(w.astype(dot_dtype), cols.astype(dot_dtype),
                       preferred_element_type=jnp.float32)

    def kernel(xext_ref, mask_ref, w1_ref, t1_ref, w2_ref, t2_ref, o_ref):
        xext = xext_ref[...]                                     # (NC, Lx), f32

        # conv1 (+ folded BN scale) as ONE (NC, 9*NC) x (9*NC, L1p) contraction, evaluated on
        # the extended frame.  The interior mask zeroes margins / junk columns, so `y` is
        # exactly the zero-padded conv2 input in flattened frame coordinates (no scratch,
        # no pad/concat round trip).
        y = mxu_dot(w1_ref[...], im2col(xext, l1p))              # (NC, L1p)
        y = jnp.maximum(y + t1_ref[...], 0.0) * mask_ref[...]

        # conv2 (+ folded BN scale) over the lane-dense output frame
        res = mxu_dot(w2_ref[...], im2col(y, lo_out))            # (NC, Lo_out)
        res = res + t2_ref[...]

        # residual = static lane slice of the extended input frame; final ReLU; unmasked store
        o_ref[...] = jnp.maximum(xext[:, 2 * m:2 * m + lo_out] + res, 0.0)

    return kernel


def _fold_bn(conv_bias, gamma, beta, mean, var):
    scale = gamma / jnp.sqrt(var + _EPS)
    shift = (conv_bias - mean) * scale + beta
    return scale.astype(jnp.float32), shift.astype(jnp.float32)


def _fold_weight(w, scale, N, C):
    # torch Conv2d weight (Cout, Cin, 3, 3) -> per-tap (9, Cout, Cin) with tap k = dy*3 + dx,
    # BN scale folded into the output-channel rows, then made block-diagonal over images so the
    # single fused dot consumes the (N*C)-row layout directly.
    w_taps = jnp.transpose(w, (2, 3, 0, 1)).reshape(9, C, C).astype(jnp.float32)
    w_taps = w_taps * scale[None, :, None]
    eye_n = jnp.eye(N, dtype=jnp.float32)
    big = jnp.einsum('kab,nm->nakmb', w_taps, eye_n)  # (N, Cout, 9, N, Cin)
    return big.reshape(N * C, 9 * N * C)


@functools.partial(jax.jit, static_argnames=("use_bf16_mxu",))
def residual_block(x_nchw, params, use_bf16_mxu=False):
    """Pallas implementation of ResidualBlock.forward. Input/output are NCHW (PyTorch)."""
    (w1, b1, g1, be1, rm1, rv1, w2, b2, g2, be2, rm2, rv2) = params
    N, C, H, W = x_nchw.shape
    NC = N * C
    Hp, Wp = H + 2, W + 2
    m = Wp + 1                              # margin consumed by one 3x3 conv in flattened coords
    Lo = H * Wp                             # output frame: H rows x (W+2) cols (junk cols dropped)
    Lo_out = _round_up(Lo, 128)             # lane-dense output frame
    L1p = _round_up(Lo_out + 2 * m, 128)    # conv1 frame (serves directly as padded conv2 input)
    Lx = _round_up(2 * m + L1p, 128)        # extended input frame

    x = x_nchw.astype(jnp.float32)

    # flattened zero-padded input with an m-lane leading margin: all 9 conv1 taps AND the
    # residual are plain static lane slices of this single (N*C, Lx) array
    xpad_flat = jnp.pad(x, ((0, 0), (0, 0), (1, 1), (1, 1))).reshape(N, C, Hp * Wp)
    x_ext = jnp.pad(xpad_flat, ((0, 0), (0, 0), (m, Lx - m - Hp * Wp))).reshape(NC, Lx)

    # interior mask over the conv1 frame: 1 at real pixels, 0 at margins / junk columns
    t = np.arange(L1p) - m
    interior = ((t >= 0) & (t < Lo) & ((t % Wp) < W)).astype(np.float32)
    mask = jnp.asarray(interior.reshape(1, L1p))

    s1, t1 = _fold_bn(b1, g1, be1, rm1, rv1)
    s2, t2 = _fold_bn(b2, g2, be2, rm2, rv2)
    w1_big = _fold_weight(w1, s1, N, C)
    w2_big = _fold_weight(w2, s2, N, C)
    t1_col = jnp.tile(t1, (N,)).reshape(NC, 1)
    t2_col = jnp.tile(t2, (N,)).reshape(NC, 1)

    dot_dtype = jnp.bfloat16 if use_bf16_mxu else jnp.float32
    kernel = _make_kernel(W, L1p, Lo_out, m, dot_dtype)

    # Single invocation, whole batch: no grid, whole arrays resident in VMEM (working set << VMEM).
    out_flat = pl.pallas_call(
        kernel,
        out_shape=jax.ShapeDtypeStruct((NC, Lo_out), jnp.float32),
        compiler_params=pltpu.CompilerParams(vmem_limit_bytes=64 * 1024 * 1024),
    )(x_ext, mask, w1_big, t1_col, w2_big, t2_col)

    # drop padding lanes / the 2 junk columns per row; layout is already NCHW
    return out_flat[:, :Lo].reshape(N, C, H, Wp)[:, :, :, :W]


def _reference(x_nchw, params):
    """Pure-JAX reference (lax.conv), same inference-mode BN semantics, NCHW like PyTorch."""
    (w1, b1, g1, be1, rm1, rv1, w2, b2, g2, be2, rm2, rv2) = params
    dn = ('NCHW', 'OIHW', 'NCHW')

    def conv_bn(x, w, b, g, be, mu, var):
        y = lax.conv_general_dilated(x, w, (1, 1), 'SAME', dimension_numbers=dn,
                                     precision=lax.Precision.HIGHEST)
        y = y + b[None, :, None, None]
        y = (y - mu[None, :, None, None]) / jnp.sqrt(var[None, :, None, None] + _EPS)
        return y * g[None, :, None, None] + be[None, :, None, None]

    r = jax.nn.relu(conv_bn(x_nchw, w1, b1, g1, be1, rm1, rv1))
    r = conv_bn(r, w2, b2, g2, be2, rm2, rv2)
    return jax.nn.relu(x_nchw + r)


if __name__ == "__main__":
    N, C, H, W = 2, 4, 16, 16
    key = jax.random.PRNGKey(0)
    ks = jax.random.split(key, 13)

    x = jax.random.normal(ks[0], (N, C, H, W), jnp.float32)

    def bn_params(k):
        ka, kb, kc, kd = jax.random.split(k, 4)
        gamma = 1.0 + 0.1 * jax.random.normal(ka, (C,), jnp.float32)
        beta = 0.1 * jax.random.normal(kb, (C,), jnp.float32)
        mean = 0.05 * jax.random.normal(kc, (C,), jnp.float32)
        var = 1.0 + 0.1 * jax.random.uniform(kd, (C,), jnp.float32)
        return gamma, beta, mean, var

    w1 = 0.1 * jax.random.normal(ks[1], (C, C, 3, 3), jnp.float32)
    b1 = 0.1 * jax.random.normal(ks[2], (C,), jnp.float32)
    g1, be1, rm1, rv1 = bn_params(ks[3])

    w2 = 0.1 * jax.random.normal(ks[4], (C, C, 3, 3), jnp.float32)
    b2 = 0.1 * jax.random.normal(ks[5], (C,), jnp.float32)
    g2, be2, rm2, rv2 = bn_params(ks[6])

    params = (w1, b1, g1, be1, rm1, rv1, w2, b2, g2, be2, rm2, rv2)

    out = jax.block_until_ready(residual_block(x, params))
    ref = jax.block_until_ready(_reference(x, params))

    assert out.shape == (N, C, H, W) and out.dtype == jnp.float32
    # tolerance leaves headroom for the MXU f32 pass structure of the in-kernel dots
    np.testing.assert_allclose(np.asarray(out), np.asarray(ref), rtol=2e-3, atol=2e-3)

    print("KERNEL_OK")
</pallas_src>

<mosaic_0001>
module attributes {stable_mosaic.version = 11 : i64} {
  func.func @kernel(%arg0: memref<8x640xf32, #tpu.memory_space<vmem>>, %arg1: memref<1x512xf32, #tpu.memory_space<vmem>>, %arg2: memref<8x72xf32, #tpu.memory_space<vmem>>, %arg3: memref<8x1xf32, #tpu.memory_space<vmem>>, %arg4: memref<8x72xf32, #tpu.memory_space<vmem>>, %arg5: memref<8x1xf32, #tpu.memory_space<vmem>>, %arg6: memref<8x384xf32, #tpu.memory_space<vmem>>) attributes {dimension_semantics = [], scalar_prefetch = 0 : i64, scratch_operands = 0 : i64, tpu.core_type = #tpu.core_type<tc>} {
    %c0 = arith.constant 0 : index
    %c0_0 = arith.constant 0 : index
    %0 = vector.load %arg0[%c0, %c0_0] : memref<8x640xf32, #tpu.memory_space<vmem>>, vector<8x640xf32>
    %c0_1 = arith.constant 0 : index
    %c0_2 = arith.constant 0 : index
    %1 = vector.load %arg2[%c0_1, %c0_2] : memref<8x72xf32, #tpu.memory_space<vmem>>, vector<8x72xf32>
    %2 = vector.extract_strided_slice %0 {offsets = [0, 0], sizes = [8, 512], strides = [1, 1]} : vector<8x640xf32> to vector<8x512xf32>
    %3 = vector.extract_strided_slice %0 {offsets = [0, 1], sizes = [8, 512], strides = [1, 1]} : vector<8x640xf32> to vector<8x512xf32>
    %4 = vector.extract_strided_slice %0 {offsets = [0, 2], sizes = [8, 512], strides = [1, 1]} : vector<8x640xf32> to vector<8x512xf32>
    %5 = vector.extract_strided_slice %0 {offsets = [0, 18], sizes = [8, 512], strides = [1, 1]} : vector<8x640xf32> to vector<8x512xf32>
    %6 = vector.extract_strided_slice %0 {offsets = [0, 19], sizes = [8, 512], strides = [1, 1]} : vector<8x640xf32> to vector<8x512xf32>
    %7 = vector.extract_strided_slice %0 {offsets = [0, 20], sizes = [8, 512], strides = [1, 1]} : vector<8x640xf32> to vector<8x512xf32>
    %8 = vector.extract_strided_slice %0 {offsets = [0, 36], sizes = [8, 512], strides = [1, 1]} : vector<8x640xf32> to vector<8x512xf32>
    %9 = vector.extract_strided_slice %0 {offsets = [0, 37], sizes = [8, 512], strides = [1, 1]} : vector<8x640xf32> to vector<8x512xf32>
    %10 = vector.extract_strided_slice %0 {offsets = [0, 38], sizes = [8, 512], strides = [1, 1]} : vector<8x640xf32> to vector<8x512xf32>
    %11 = tpu.concatenate %2, %3, %4, %5, %6, %7, %8, %9, %10 in 0 : vector<8x512xf32>, vector<8x512xf32>, vector<8x512xf32>, vector<8x512xf32>, vector<8x512xf32>, vector<8x512xf32>, vector<8x512xf32>, vector<8x512xf32>, vector<8x512xf32> -> vector<72x512xf32>
    %cst = arith.constant dense<0.000000e+00> : vector<8x512xf32>
    %12 = tpu.matmul %1, %11, %cst {dimension_numbers = #tpu.dot_dimension_numbers<[1], [0], [0], [1], [0, 0, 1, 1], [], []>} : vector<8x72xf32>, vector<72x512xf32>, vector<8x512xf32> -> vector<8x512xf32>
    %c0_3 = arith.constant 0 : index
    %c0_4 = arith.constant 0 : index
    %13 = vector.load %arg3[%c0_3, %c0_4] : memref<8x1xf32, #tpu.memory_space<vmem>>, vector<8x1xf32>
    %14 = vector.broadcast %13 : vector<8x1xf32> to vector<8x512xf32>
    %15 = arith.addf %12, %14 : vector<8x512xf32>
    %cst_5 = arith.constant 0.000000e+00 : f32
    %16 = vector.broadcast %cst_5 : f32 to vector<8x512xf32>
    %17 = arith.maximumf %15, %16 : vector<8x512xf32>
    %c0_6 = arith.constant 0 : index
    %c0_7 = arith.constant 0 : index
    %18 = vector.load %arg1[%c0_6, %c0_7] : memref<1x512xf32, #tpu.memory_space<vmem>>, vector<1x512xf32>
    %19 = vector.broadcast %18 : vector<1x512xf32> to vector<8x512xf32>
    %20 = arith.mulf %17, %19 : vector<8x512xf32>
    %c0_8 = arith.constant 0 : index
    %c0_9 = arith.constant 0 : index
    %21 = vector.load %arg4[%c0_8, %c0_9] : memref<8x72xf32, #tpu.memory_space<vmem>>, vector<8x72xf32>
    %22 = vector.extract_strided_slice %20 {offsets = [0, 0], sizes = [8, 384], strides = [1, 1]} : vector<8x512xf32> to vector<8x384xf32>
    %23 = vector.extract_strided_slice %20 {offsets = [0, 1], sizes = [8, 384], strides = [1, 1]} : vector<8x512xf32> to vector<8x384xf32>
    %24 = vector.extract_strided_slice %20 {offsets = [0, 2], sizes = [8, 384], strides = [1, 1]} : vector<8x512xf32> to vector<8x384xf32>
    %25 = vector.extract_strided_slice %20 {offsets = [0, 18], sizes = [8, 384], strides = [1, 1]} : vector<8x512xf32> to vector<8x384xf32>
    %26 = vector.extract_strided_slice %20 {offsets = [0, 19], sizes = [8, 384], strides = [1, 1]} : vector<8x512xf32> to vector<8x384xf32>
    %27 = vector.extract_strided_slice %20 {offsets = [0, 20], sizes = [8, 384], strides = [1, 1]} : vector<8x512xf32> to vector<8x384xf32>
    %28 = vector.extract_strided_slice %20 {offsets = [0, 36], sizes = [8, 384], strides = [1, 1]} : vector<8x512xf32> to vector<8x384xf32>
    %29 = vector.extract_strided_slice %20 {offsets = [0, 37], sizes = [8, 384], strides = [1, 1]} : vector<8x512xf32> to vector<8x384xf32>
    %30 = vector.extract_strided_slice %20 {offsets = [0, 38], sizes = [8, 384], strides = [1, 1]} : vector<8x512xf32> to vector<8x384xf32>
    %31 = tpu.concatenate %22, %23, %24, %25, %26, %27, %28, %29, %30 in 0 : vector<8x384xf32>, vector<8x384xf32>, vector<8x384xf32>, vector<8x384xf32>, vector<8x384xf32>, vector<8x384xf32>, vector<8x384xf32>, vector<8x384xf32>, vector<8x384xf32> -> vector<72x384xf32>
    %cst_10 = arith.constant dense<0.000000e+00> : vector<8x384xf32>
    %32 = tpu.matmul %21, %31, %cst_10 {dimension_numbers = #tpu.dot_dimension_numbers<[1], [0], [0], [1], [0, 0, 1, 1], [], []>} : vector<8x72xf32>, vector<72x384xf32>, vector<8x384xf32> -> vector<8x384xf32>
    %c0_11 = arith.constant 0 : index
    %c0_12 = arith.constant 0 : index
    %33 = vector.load %arg5[%c0_11, %c0_12] : memref<8x1xf32, #tpu.memory_space<vmem>>, vector<8x1xf32>
    %34 = vector.broadcast %33 : vector<8x1xf32> to vector<8x384xf32>
    %35 = arith.addf %32, %34 : vector<8x384xf32>
    %36 = vector.extract_strided_slice %0 {offsets = [0, 38], sizes = [8, 384], strides = [1, 1]} : vector<8x640xf32> to vector<8x384xf32>
    %37 = arith.addf %36, %35 : vector<8x384xf32>
    %cst_13 = arith.constant 0.000000e+00 : f32
    %38 = vector.broadcast %cst_13 : f32 to vector<8x384xf32>
    %39 = arith.maximumf %37, %38 : vector<8x384xf32>
    %c0_14 = arith.constant 0 : index
    %c0_15 = arith.constant 0 : index
    %40 = vector.load %arg6[%c0_14, %c0_15] : memref<8x384xf32, #tpu.memory_space<vmem>>, vector<8x384xf32>
    tpu.vector_store %arg6[%c0_14, %c0_15], %39 {strides = array<i32>} : memref<8x384xf32, #tpu.memory_space<vmem>>, vector<8x384xf32>,
    return
  }
}

</mosaic_0001>

<bundles_post_ra>
// kernel: tile.13
= control target key start
LH: loop header
LB: loop body
LE: loop exit
PB: predicated region body
PF: predicated region fallthrough
CT: control target
= control target key end

     0   :  { %s22_s0 = inlined_call_operand.vmem [shape: f32[4], index: 0, kind: input, shape index: {}]   ;;  %s23_s1 = inlined_call_operand.vmem [shape: f32[2,4], index: 1, kind: output, shape index: {}]  }
   0x1   :  { %v4_v0 = vld [vmem:[%s22_s0] ss:$0 sm:$0xff] }
   0x2   :  { %5 = vst [vmem:[%s23_s1] sm:$0x3] %v4_v0 }

// kernel: tile.0
= control target key start
LH: loop header
LB: loop body
LE: loop exit
PB: predicated region body
PF: predicated region fallthrough
CT: control target
= control target key end

     0   :  { %s95_s0 = inlined_call_operand.vmem [shape: f32[2,4], index: 0, kind: input, shape index: {}]   ;;  %s96_s1 = inlined_call_operand.hbm [shape: f32[8,1], index: 1, kind: output, shape index: {}]  }
   0x1   :  { %v5_v0 = vld [vmem:[%s95_s0] sm:$0x3] }
   0x2   :  { %6 = vst [vmem:[#allocation2] sm:$0x3] %v5_v0 }
   0x3   :  { %2 = vsyncpa [#allocation1], 0  ;;  %s66_s0 = smov 127   ;;  %s67_s8 = smov 125   ;;  %vm8_vm0 = vcmask 7168  }
   0x4   :  { %s68_s9 = smov 126   ;;  %s69_s10 = smov [#allocation0]  }
   0x5   :  { %s32_s11 = sshll.u32 %s69_s10, 4  ;;  %s33_s11 = int_to_ptr.vmem [resolvable:$true] %s32_s11 }
   0x6   :  { %s42_s12 = scalar_lea.vmem %s33_s11, 128  ;;  %p47_p1 = scmp.lt.s32.totalorder %s33_s11, %s33_s11 }
   0x7   :  { %p43_p0 = scmp.ne.s32.totalorder %s33_s11, %s42_s12  ;;  %p48_p2 = scmp.lt.s32.totalorder %s42_s12, %s42_s12 }
   0x9   :  { %v10_v1 = vld [vmem:[#allocation2] sm:$0x3]   ;;  %p49_p3 = por %p48_p2, %p47_p1 }
   0xa   :  { %v22_v2 = vld [vmem:[#allocation2] sm:$0x3]   ;;  %11 = vrot.lane.b32.xlu0 %v10_v1, %s66_s0 }
   0xb   :  { %23 = vrot.lane.b32.xlu1 %v22_v2, %s67_s8  ;;  %v7_v3 = vld [vmem:[#allocation2] sm:$0x3]   ;;  %p50_p4 = pnand %p49_p3, %p43_p0 }
   0xc   :  { %v16_v4 = vld [vmem:[#allocation2] sm:$0x3]   ;;  %9 = vst.msk [vmem:[#allocation0] ss:$4 sm:$0x3] %vm8_vm0, %v7_v3  }
   0xe   :  { %17 = vrot.lane.b32.xlu0 %v16_v4, %s68_s9 }
  0x7c   :  { %v12_v5 = vpop.permute.xlu0 %11  }
  0x7d   :  { %v24_v6 = vpop.permute.xlu1 %23   ;;  %15 = vst.msk [vmem:[#allocation0 + $0x1] ss:$4 sm:$0x3] %vm8_vm0, %v12_v5  }
  0x7e   :  { %27 = vst.msk [vmem:[#allocation0 + $0x3] ss:$4 sm:$0x3] %vm8_vm0, %v24_v6  }
  0x80   :  { %v18_v7 = vpop.permute.xlu0 %17  }
  0x81   :  { %21 = vst.msk [vmem:[#allocation0 + $0x2] ss:$4 sm:$0x3] %vm8_vm0, %v18_v7  }
  0x82   :  { %53 = shalt.err (!%p50_p4)
}
  0x83   :  { %s54_s15 = scalar_lea.hbm %s96_s1, 128 }
  0x84   :  { %p55_p5 = scmp.ne.s32.totalorder %s96_s1, %s54_s15  ;;  %p58_p6 = scmp.lt.u32.totalorder %s54_s15, %s96_s1 }
  0x86   :  { %p60_p7 = pnand %p58_p6, %p55_p5 }
  0x88   :  { %63 = shalt.err (!%p60_p7)
}
  0x89   :  { %35 = dma.vmem_to_hbm [thread:$0]  %s33_s11, 128, %s96_s1, [#allocation1]  }
  0x8a   :  { %64 = dma.done.wait [#allocation1], 128  }
  0x8b   :  { %65 = vsyncadd [#allocation1], 4294967168 }
  0x8c   :  { %37 = vsyncpa [#allocation1], 1 }

// kernel: residual_block.1
= control target key start
LH: loop header
LB: loop body
LE: loop exit
PB: predicated region body
PF: predicated region fallthrough
CT: control target
= control target key end

     0   :  { %11 = vsyncpa [#allocation3], 0  ;;  %s1472_s0 = inlined_call_operand.hbm [shape: f32[8,640], index: 0, kind: input, shape index: {}]   ;;  %s1473_s1 = inlined_call_operand.hbm [shape: f32[1,512], index: 1, kind: input, shape index: {}]   ;;  %s1474_s2 = inlined_call_operand.hbm [shape: f32[8,72], index: 2, kind: input, shape index: {}]   ;;  %s1475_s3 = inlined_call_operand.hbm [shape: f32[8,1], index: 3, kind: input, shape index: {}]   ;;  %s1476_s4 = inlined_call_operand.hbm [shape: f32[8,72], index: 4, kind: input, shape index: {}]   ;;  %s1477_s5 = inlined_call_operand.hbm [shape: f32[8,1], index: 5, kind: input, shape index: {}]   ;;  %s1478_s6 = inlined_call_operand.hbm [shape: f32[8,384], index: 6, kind: output, shape index: {}]  }
   0x1   :  { %12 = vsyncpa [#allocation6], 0 }
   0x2   :  { %13 = vsyncpa [#allocation9], 0 }
   0x3   :  { %14 = vsyncpa [#allocation12], 0 }
   0x4   :  { %15 = vsyncpa [#allocation4], 0  ;;  %s1189_s21 = smov [#allocation5]   ;;  %s1190_s23 = smov [#allocation8]  }
   0x5   :  { %s32_s22 = sshll.u32 %s1189_s21, 4  ;;  %s52_s24 = sshll.u32 %s1190_s23, 4  ;;  %s33_s22 = int_to_ptr.vmem [resolvable:$true] %s32_s22  ;;  %s53_s24 = int_to_ptr.vmem [resolvable:$true] %s52_s24 }
   0x6   :  { %s1025_s27 = scalar_lea.hbm %s1473_s1, 64 }
   0x7   :  { %p1026_p0 = scmp.ne.s32.totalorder %s1473_s1, %s1025_s27  ;;  %p1029_p1 = scmp.lt.u32.totalorder %s1025_s27, %s1473_s1 }
   0x9   :  { %p1031_p2 = pnand %p1029_p1, %p1026_p0 }
   0xb   :  { %1034 = shalt.err (!%p1031_p2)
}
   0xc   :  { %s1035_s8 = scalar_lea.vmem %s33_s22, 64  ;;  %p1040_p4 = scmp.lt.s32.totalorder %s33_s22, %s33_s22 }
   0xd   :  { %p1036_p3 = scmp.ne.s32.totalorder %s33_s22, %s1035_s8  ;;  %p1041_p5 = scmp.lt.s32.totalorder %s1035_s8, %s1035_s8 }
   0xf   :  { %p1042_p6 = por %p1041_p5, %p1040_p4 }
  0x11   :  { %p1043_p7 = pnand %p1042_p6, %p1036_p3 }
  0x13   :  { %1046 = shalt.err (!%p1043_p7)
}
  0x14   :  { %35 = dma.hbm_to_vmem [thread:$0]  %s1473_s1, 64, %s33_s22, [#allocation6]  }
  0x15   :  { %s1047_s13 = scalar_lea.hbm %s1475_s3, 128 }
  0x16   :  { %p1048_p8 = scmp.ne.s32.totalorder %s1475_s3, %s1047_s13  ;;  %p1051_p9 = scmp.lt.u32.totalorder %s1047_s13, %s1475_s3 }
  0x18   :  { %p1053_p10 = pnand %p1051_p9, %p1048_p8 }
  0x1a   :  { %1056 = shalt.err (!%p1053_p10)
}
  0x1b   :  { %s1057_s18 = scalar_lea.vmem %s53_s24, 128  ;;  %p1062_p12 = scmp.lt.s32.totalorder %s53_s24, %s53_s24 }
  0x1c   :  { %p1058_p11 = scmp.ne.s32.totalorder %s53_s24, %s1057_s18  ;;  %p1063_p13 = scmp.lt.s32.totalorder %s1057_s18, %s1057_s18 }
  0x1e   :  { %p1064_p0 = por %p1063_p13, %p1062_p12 }
  0x20   :  { %p1065_p1 = pnand %p1064_p0, %p1058_p11 }
  0x22   :  { %1068 = shalt.err (!%p1065_p1)
}
  0x23   :  { %55 = dma.hbm_to_vmem [thread:$0]  %s1475_s3, 128, %s53_s24, [#allocation9]  }
  0x24   :  { %s1191_s20 = smov [#allocation2]   ;;  %s1192_s22 = smov [#allocation7]  }
  0x25   :  { %s22_s21 = sshll.u32 %s1191_s20, 4  ;;  %s42_s23 = sshll.u32 %s1192_s22, 4  ;;  %s23_s21 = int_to_ptr.vmem [resolvable:$true] %s22_s21  ;;  %s43_s23 = int_to_ptr.vmem [resolvable:$true] %s42_s23 }
  0x26   :  { %s1069_s27 = scalar_lea.hbm %s1472_s0, 640 }
  0x27   :  { %p1070_p2 = scmp.ne.s32.totalorder %s1472_s0, %s1069_s27  ;;  %p1073_p3 = scmp.lt.u32.totalorder %s1069_s27, %s1472_s0 }
  0x29   :  { %p1075_p4 = pnand %p1073_p3, %p1070_p2 }
  0x2b   :  { %1078 = shalt.err (!%p1075_p4)
}
  0x2c   :  { %s1079_s3 = scalar_lea.vmem %s23_s21, 640  ;;  %p1084_p6 = scmp.lt.s32.totalorder %s23_s21, %s23_s21 }
  0x2d   :  { %p1080_p5 = scmp.ne.s32.totalorder %s23_s21, %s1079_s3  ;;  %p1085_p7 = scmp.lt.s32.totalorder %s1079_s3, %s1079_s3 }
  0x2f   :  { %p1086_p8 = por %p1085_p7, %p1084_p6 }
  0x31   :  { %p1087_p9 = pnand %p1086_p8, %p1080_p5 }
  0x33   :  { %1090 = shalt.err (!%p1087_p9)
}
  0x34   :  { %25 = dma.hbm_to_vmem [thread:$0]  %s1472_s0, 640, %s23_s21, [#allocation3]  }
  0x35   :  { %s1091_s11 = scalar_lea.hbm %s1474_s2, 128 }
  0x36   :  { %p1092_p10 = scmp.ne.s32.totalorder %s1474_s2, %s1091_s11  ;;  %p1095_p11 = scmp.lt.u32.totalorder %s1091_s11, %s1474_s2 }
  0x38   :  { %p1097_p12 = pnand %p1095_p11, %p1092_p10 }
  0x3a   :  { %1100 = shalt.err (!%p1097_p12)
}
  0x3b   :  { %s1101_s16 = scalar_lea.vmem %s43_s23, 128  ;;  %p1106_p0 = scmp.lt.s32.totalorder %s43_s23, %s43_s23 }
  0x3c   :  { %p1102_p13 = scmp.ne.s32.totalorder %s43_s23, %s1101_s16  ;;  %p1107_p1 = scmp.lt.s32.totalorder %s1101_s16, %s1101_s16 }
  0x3e   :  { %p1108_p2 = por %p1107_p1, %p1106_p0 }
  0x40   :  { %p1109_p3 = pnand %p1108_p2, %p1102_p13 }
  0x42   :  { %1112 = shalt.err (!%p1109_p3)
}
  0x43   :  { %45 = dma.hbm_to_vmem [thread:$0]  %s1474_s2, 128, %s43_s23, [#allocation6]  }
  0x44   :  { %s1193_s18 = smov [#allocation10]   ;;  %s1194_s19 = smov [#allocation11]  }
  0x45   :  { %s62_s1 = sshll.u32 %s1193_s18, 4  ;;  %s72_s20 = sshll.u32 %s1194_s19, 4  ;;  %s63_s1 = int_to_ptr.vmem [resolvable:$true] %s62_s1  ;;  %s73_s20 = int_to_ptr.vmem [resolvable:$true] %s72_s20 }
  0x46   :  { %s1113_s25 = scalar_lea.hbm %s1476_s4, 128 }
  0x47   :  { %p1114_p4 = scmp.ne.s32.totalorder %s1476_s4, %s1113_s25  ;;  %p1117_p5 = scmp.lt.u32.totalorder %s1113_s25, %s1476_s4 }
  0x49   :  { %p1119_p6 = pnand %p1117_p5, %p1114_p4 }
  0x4b   :  { %1122 = shalt.err (!%p1119_p6)
}
  0x4c   :  { %s1123_s2 = scalar_lea.vmem %s63_s1, 128  ;;  %p1128_p8 = scmp.lt.s32.totalorder %s63_s1, %s63_s1 }
  0x4d   :  { %p1124_p7 = scmp.ne.s32.totalorder %s63_s1, %s1123_s2  ;;  %p1129_p9 = scmp.lt.s32.totalorder %s1123_s2, %s1123_s2 }
  0x4f   :  { %p1130_p10 = por %p1129_p9, %p1128_p8 }
  0x51   :  { %p1131_p11 = pnand %p1130_p10, %p1124_p7 }
  0x53   :  { %1134 = shalt.err (!%p1131_p11)
}
  0x54   :  { %65 = dma.hbm_to_vmem [thread:$0]  %s1476_s4, 128, %s63_s1, [#allocation9]  }
  0x55   :  { %s1135_s24 = scalar_lea.hbm %s1477_s5, 128 }
  0x56   :  { %p1136_p12 = scmp.ne.s32.totalorder %s1477_s5, %s1135_s24  ;;  %p1139_p13 = scmp.lt.u32.totalorder %s1135_s24, %s1477_s5 }
  0x58   :  { %p1141_p0 = pnand %p1139_p13, %p1136_p12 }
  0x5a   :  { %1144 = shalt.err (!%p1141_p0)
}
  0x5b   :  { %s1145_s12 = scalar_lea.vmem %s73_s20, 128  ;;  %p1150_p2 = scmp.lt.s32.totalorder %s73_s20, %s73_s20 }
  0x5c   :  { %p1146_p1 = scmp.ne.s32.totalorder %s73_s20, %s1145_s12  ;;  %p1151_p3 = scmp.lt.s32.totalorder %s1145_s12, %s1145_s12 }
  0x5e   :  { %p1152_p4 = por %p1151_p3, %p1150_p2 }
  0x60   :  { %p1153_p5 = pnand %p1152_p4, %p1146_p1 }
  0x62   :  { %1156 = shalt.err (!%p1153_p5)
}
  0x63   :  { %75 = dma.hbm_to_vmem [thread:$0]  %s1477_s5, 128, %s73_s20, [#allocation12]  }
  0x64   :  { %1179 = dma.done.wait [#allocation3], 640  }
  0x65   :  { %1180 = vsyncadd [#allocation3], 4294966656 }
  0x66   :  { %1181 = dma.done.wait [#allocation6], 192  }
  0x67   :  { %1182 = vsyncadd [#allocation6], 4294967104 }
  0x68   :  { %1183 = dma.done.wait [#allocation9], 256  }
  0x69   :  { %1184 = vsyncadd [#allocation9], 4294967040 }
  0x6a   :  { %1185 = dma.done.wait [#allocation12], 128  }
  0x6b   :  { %1186 = vsyncadd [#allocation12], 4294967168  ;;  %v98_v0 = vld [vmem:[#allocation2 + $0x20] sm:$0xff]  ;;  %v1316_v1 = vld [vmem:[#allocation2 + $0x8] sm:$0xff]  ;;  %s1195_s14 = smov 127   ;;  %s1196_s5 = smov 126  }
  0x6c   :  { %v1318_v2 = vld [vmem:[#allocation2 + $0x10] sm:$0xff]  ;;  %113 = vrot.lane.b32.xlu1 %v98_v0, %s1195_s14  ;;  %v1323_v4 = vld [vmem:[#allocation2] sm:$0xff]  ;;  %v1325_v5 = vld [vmem:[#allocation2 + $0x18] sm:$0xff]  ;;  %s1197_s15 = smov 110   ;;  %s1198_s16 = smov 109   ;;  %v1202_v7 = vmov 0.0  }
  0x6d   :  { %v884_v3 = vpack.i.bf16 %v1318_v2, %v1316_v1  ;;  %v889_v6 = vpack.i.bf16 %v1325_v5, %v1323_v4  ;;  %s1199_s0 = smov 108   ;;  %s1200_s17 = smov 92   ;;  %331 = vmatprep.mubr.f32.mxu0 %v1202_v7  ;;  %402 = vmatprep.mubr.f32.mxu1 %v1202_v7  ;;  %v1204_v8 = vmov 0   ;;  %v257_v9 = vld [vmem:[#allocation8] sm:$0xff]  ;;  %vm115_vm0 = vcmask 1039360  }
  0x6e   :  { %s1201_s18 = smov 91   ;;  %s1203_s1 = smov 90   ;;  %954 = vset.pattern.permute.xlu0 %v1204_v8  ;;  %vm134_vm1 = vcmask 1031168   ;;  %vm153_vm2 = vcmask 900096   ;;  %vm172_vm3 = vcmask 891904   ;;  %vm191_vm4 = vcmask 883712  }
  0x6f   :  { %885 = vrot.lane.b32.xlu0 %v884_v3, %s1195_s14  ;;  %vm210_vm5 = vcmask 752640   ;;  %vm229_vm6 = vcmask 744448   ;;  %vm248_vm7 = vcmask 736256   ;;  %vm263_vm8 = vcmask 588800   ;;  %s1207_s19 = smov 38   ;;  %s1208_s20 = smov [#allocation13]  }
  0x70   :  { %895 = vrot.lane.b32.xlu1 %v884_v3, %s1196_s5  ;;  %vm1206_vm9 = vmmov 0   ;;  %vm715_vm10 = vcmask 310272   ;;  %s757_s21 = sshll.u32 %s1208_s20, 4  ;;  %s758_s21 = int_to_ptr.vmem [resolvable:$true] %s757_s21 }
  0x71   :  { %s1157_s22 = scalar_lea.vmem %s758_s21, 384  ;;  %p1162_p7 = scmp.lt.s32.totalorder %s758_s21, %s758_s21 }
  0x72   :  { %p1158_p6 = scmp.ne.s32.totalorder %s758_s21, %s1157_s22  ;;  %p1163_p8 = scmp.lt.s32.totalorder %s1157_s22, %s1157_s22 }
  0x73   :  { %890 = vrot.lane.b32.xlu0 %v889_v6, %s1195_s14 }
  0x74   :  { %905 = vrot.lane.b32.xlu1 %v889_v6, %s1196_s5  ;;  %p1164_p9 = por %p1163_p8, %p1162_p7 }
  0x76   :  { %p1165_p10 = pnand %p1164_p9, %p1158_p6 }
  0x77   :  { %900 = vrot.lane.b32.xlu0 %v884_v3, %s1197_s15 }
  0x78   :  { %910 = vrot.lane.b32.xlu1 %v889_v6, %s1197_s15 }
  0x7b   :  { %132 = vrot.lane.b32.xlu0 %v98_v0, %s1196_s5 }
  0x7c   :  { %915 = vrot.lane.b32.xlu1 %v884_v3, %s1198_s16 }
  0x7f   :  { %151 = vrot.lane.b32.xlu0 %v98_v0, %s1197_s15 }
  0x80   :  { %925 = vrot.lane.b32.xlu1 %v889_v6, %s1198_s16 }
  0x83   :  { %920 = vrot.lane.b32.xlu0 %v884_v3, %s1199_s0 }
  0x84   :  { %930 = vrot.lane.b32.xlu1 %v889_v6, %s1199_s0 }
  0x87   :  { %170 = vrot.lane.b32.xlu0 %v98_v0, %s1198_s16 }
  0x88   :  { %935 = vrot.lane.b32.xlu1 %v884_v3, %s1200_s17 }
  0x8b   :  { %189 = vrot.lane.b32.xlu0 %v98_v0, %s1199_s0 }
  0x8c   :  { %945 = vrot.lane.b32.xlu1 %v889_v6, %s1200_s17 }
  0x8f   :  { %940 = vrot.lane.b32.xlu0 %v884_v3, %s1201_s18 }
  0x90   :  { %950 = vrot.lane.b32.xlu1 %v889_v6, %s1201_s18 }
  0x93   :  { %208 = vrot.lane.b32.xlu0 %v98_v0, %s1200_s17 }
  0x94   :  { %240 = vrot.lane.b32.xlu1 %v1316_v1, %s1203_s1 }
  0x97   :  { %227 = vrot.lane.b32.xlu0 %v98_v0, %s1201_s18 }
  0x98   :  { %238 = vrot.lane.b32.xlu1 %v1323_v4, %s1203_s1 }
  0x9b   :  { %242 = vrot.lane.b32.xlu0 %v1318_v2, %s1203_s1 }
  0x9c   :  { %246 = vrot.lane.b32.xlu1 %v98_v0, %s1203_s1 }
  0x9f   :  { %244 = vrot.lane.b32.xlu0 %v1325_v5, %s1203_s1 }
  0xa3   :  { %260 = vperm.xlu0 %954, %v257_v9  }
  0xde   :  { %v114_v10 = vpop.permute.xlu1 %113 }
  0xe1   :  { %v886_v11 = vpop.permute.xlu0 %885 }
  0xe2   :  { %v888_v12 = vunpack.i.h.bf16 %v886_v11  ;;  %v887_v13 = vunpack.i.l.bf16 %v886_v11  ;;  %v896_v14 = vpop.permute.xlu1 %895 }
  0xe3   :  { %v898_v21 = vunpack.i.h.bf16 %v896_v14  ;;  %v897_v22 = vunpack.i.l.bf16 %v896_v14 }
  0xe4   :  { %v117_v15 = vsel %vm115_vm0, %v887_v13, %v888_v12 }
  0xe5   :  { %v891_v16 = vpop.permute.xlu0 %890  ;;  %v804_v17 = vpack.c.bf16 %v117_v15, %v1316_v1  ;;  %v136_v35 = vsel %vm134_vm1, %v897_v22, %v898_v21 }
  0xe6   :  { %v893_v18 = vunpack.i.h.bf16 %v891_v16  ;;  %v892_v19 = vunpack.i.l.bf16 %v891_v16  ;;  %v906_v20 = vpop.permute.xlu1 %905 }
  0xe7   :  { %805 = vmatprep.subr.bf16.mxu0 %v804_v17  ;;  %v907_v29 = vunpack.i.l.bf16 %v906_v20  ;;  %v908_v42 = vunpack.i.h.bf16 %v906_v20 }
  0xe8   :  { %v116_v23 = vsel %vm115_vm0, %v892_v19, %v887_v13  ;;  %v119_v24 = vsel %vm115_vm0, %v893_v18, %v114_v10  ;;  %v118_v28 = vsel %vm115_vm0, %v888_v12, %v893_v18 }
  0xe9   :  { %v901_v25 = vpop.permute.xlu0 %900  ;;  %v806_v26 = vpack.c.bf16 %v116_v23, %v1323_v4  ;;  %v820_v27 = vpack.c.bf16 %v119_v24, %v1325_v5  ;;  %v822_v32 = vpack.c.bf16 %v118_v28, %v1318_v2  ;;  %v135_v40 = vsel %vm134_vm1, %v907_v29, %v897_v22 }
  0xea   :  { %v903_v30 = vunpack.i.h.bf16 %v901_v25  ;;  %v902_v31 = vunpack.i.l.bf16 %v901_v25  ;;  %v911_v33 = vpop.permute.xlu1 %910  ;;  %v137_v51 = vsel %vm134_vm1, %v898_v21, %v908_v42 }
  0xeb   :  { %807 = vmatpush1.bf16.msra.mxu0 %v806_v26  ;;  %821 = vmatprep.subr.bf16.mxu1 %v820_v27  ;;  %v912_v34 = vunpack.i.l.bf16 %v911_v33  ;;  %v913_v37 = vunpack.i.h.bf16 %v911_v33 }
  0xec   :  { %823 = vmatpush1.bf16.msra.mxu1 %v822_v32  ;;  %v155_v36 = vsel %vm153_vm2, %v902_v31, %v903_v30 }
  0xed   :  { %v133_v38 = vpop.permute.xlu0 %132  ;;  %v808_v39 = vpack.c.bf16 %v155_v36, %v136_v35  ;;  %v154_v41 = vsel %vm153_vm2, %v912_v34, %v902_v31  ;;  %v156_v46 = vsel %vm153_vm2, %v903_v30, %v913_v37 }
  0xee   :  { %v916_v43 = vpop.permute.xlu1 %915  ;;  %v810_v44 = vpack.c.bf16 %v154_v41, %v135_v40  ;;  %v138_v47 = vsel %vm134_vm1, %v908_v42, %v133_v38  ;;  %v826_v54 = vpack.c.bf16 %v156_v46, %v137_v51 }
  0xef   :  { %809 = vmatprep.subr.bf16.mxu0 %v808_v39  ;;  %v918_v52 = vunpack.i.h.bf16 %v916_v43  ;;  %v917_v53 = vunpack.i.l.bf16 %v916_v43 }
  0xf0   :  { %811 = vmatpush1.bf16.msra.mxu0 %v810_v44 }
  0xf1   :  { %v152_v45 = vpop.permute.xlu0 %151  ;;  %v174_v61 = vsel %vm172_vm3, %v917_v53, %v918_v52 }
  0xf2   :  { %v157_v48 = vsel %vm153_vm2, %v913_v37, %v152_v45  ;;  %v926_v50 = vpop.permute.xlu1 %925 }
  0xf3   :  { %v824_v49 = vpack.c.bf16 %v157_v48, %v138_v47  ;;  %v927_v56 = vunpack.i.l.bf16 %v926_v50  ;;  %v928_v9 = vunpack.i.h.bf16 %v926_v50  ;;  %v99_v48 = vld [vmem:[#allocation7] sm:$0xff] }
  0xf5   :  { %v921_v55 = vpop.permute.xlu0 %920  ;;  %825 = vmatprep.subr.bf16.mxu1 %v824_v49  ;;  %v173_v6 = vsel %vm172_vm3, %v927_v56, %v917_v53  ;;  %v175_v18 = vsel %vm172_vm3, %v918_v52, %v928_v9 }
  0xf6   :  { %v923_v57 = vunpack.i.h.bf16 %v921_v55  ;;  %v922_v58 = vunpack.i.l.bf16 %v921_v55  ;;  %827 = vmatpush1.bf16.msra.mxu1 %v826_v54  ;;  %v931_v59 = vpop.permute.xlu1 %930  ;;  %v415_v54 = vlaneseq }
  0xf7   :  { %v932_v60 = vunpack.i.l.bf16 %v931_v59  ;;  %v933_v63 = vunpack.i.h.bf16 %v931_v59  ;;  %v413_v59 = vld [vmem:[#allocation5] sm:$0xf] }
  0xf8   :  { %v193_v62 = vsel %vm191_vm4, %v922_v58, %v923_v57  ;;  %v416_v55 = vshrl.u32 %v415_v54, 7 }
  0xf9   :  { %v171_v0 = vpop.permute.xlu0 %170  ;;  %v812_v3 = vpack.c.bf16 %v193_v62, %v174_v61  ;;  %v192_v8 = vsel %vm191_vm4, %v932_v60, %v922_v58  ;;  %v194_v13 = vsel %vm191_vm4, %v923_v57, %v933_v63 }
  0xfa   :  { %v936_v10 = vpop.permute.xlu1 %935  ;;  %v814_v11 = vpack.c.bf16 %v192_v8, %v173_v6  ;;  %v176_v14 = vsel %vm172_vm3, %v928_v9, %v171_v0  ;;  %v830_v21 = vpack.c.bf16 %v194_v13, %v175_v18  ;;  %v421_v57 = vsub.s32 1, %v416_v55 }
  0xfb   :  { %813 = vmatprep.subr.bf16.mxu0 %v812_v3  ;;  %v938_v19 = vunpack.i.h.bf16 %v936_v10  ;;  %v937_v20 = vunpack.i.l.bf16 %v936_v10  ;;  %v425_v61 = vsub.s32 2, %v416_v55  ;;  %v429_v0 = vsub.s32 3, %v416_v55 }
  0xfc   :  { %815 = vmatpush1.bf16.msra.mxu0 %v814_v11  ;;  %v417_v8 = vsub.s32 0, %v416_v55 }
  0xfd   :  { %v190_v12 = vpop.permute.xlu0 %189  ;;  %v212_v28 = vsel %vm210_vm5, %v937_v20, %v938_v19  ;;  %v426_v11 = vrot.slane %v413_v59, %v425_v61 }
  0xfe   :  { %v195_v15 = vsel %vm191_vm4, %v933_v63, %v190_v12  ;;  %v946_v17 = vpop.permute.xlu1 %945  ;;  %v422_v63 = vrot.slane %v413_v59, %v421_v57  ;;  %v418_v18 = vrot.slane %v413_v59, %v417_v8 }
  0xff   :  { %v828_v16 = vpack.c.bf16 %v195_v15, %v176_v14  ;;  %v947_v23 = vunpack.i.l.bf16 %v946_v17  ;;  %v948_v35 = vunpack.i.h.bf16 %v946_v17 }
 0x101   :  { %v941_v22 = vpop.permute.xlu0 %940  ;;  %829 = vmatprep.subr.bf16.mxu1 %v828_v16  ;;  %v211_v33 = vsel %vm210_vm5, %v947_v23, %v937_v20  ;;  %v213_v44 = vsel %vm210_vm5, %v938_v19, %v948_v35  ;;  %v430_v16 = vrot.slane %v413_v59, %v429_v0 }
 0x102   :  { %v943_v24 = vunpack.i.h.bf16 %v941_v22  ;;  %v942_v25 = vunpack.i.l.bf16 %v941_v22  ;;  %831 = vmatpush1.bf16.msra.mxu1 %v830_v21  ;;  %v951_v26 = vpop.permute.xlu1 %950  ;;  %v1205_v21 = vmov 0.0|0.0  }
 0x103   :  { %v952_v27 = vunpack.i.l.bf16 %v951_v26  ;;  %v953_v30 = vunpack.i.h.bf16 %v951_v26  ;;  %v556_v26 = vld [vmem:[#allocation11] sm:$0xff] }
 0x104   :  { %v231_v29 = vsel %vm229_vm6, %v942_v25, %v943_v24 }
 0x105   :  { %v209_v31 = vpop.permute.xlu0 %208  ;;  %v816_v32 = vpack.c.bf16 %v231_v29, %v212_v28  ;;  %v230_v34 = vsel %vm229_vm6, %v952_v27, %v942_v25  ;;  %v232_v39 = vsel %vm229_vm6, %v943_v24, %v953_v30 }
 0x106   :  { %v241_v36 = vpop.permute.xlu1 %240  ;;  %v818_v37 = vpack.c.bf16 %v230_v34, %v211_v33  ;;  %v214_v40 = vsel %vm210_vm5, %v948_v35, %v209_v31  ;;  %v834_v45 = vpack.c.bf16 %v232_v39, %v213_v44 }
 0x107   :  { %817 = vmatprep.subr.bf16.mxu0 %v816_v32 }
 0x108   :  { %819 = vmatpush1.bf16.msra.mxu0 %v818_v37 }
 0x109   :  { %v228_v38 = vpop.permute.xlu0 %227 }
 0x10a   :  { %v233_v41 = vsel %vm229_vm6, %v953_v30, %v228_v38  ;;  %v239_v43 = vpop.permute.xlu1 %238 }
 0x10b   :  { %v832_v42 = vpack.c.bf16 %v233_v41, %v214_v40  ;;  %v249_v49 = vsel %vm248_vm7, %v239_v43, %v241_v36 }
 0x10d   :  { %v243_v46 = vpop.permute.xlu0 %242  ;;  %833 = vmatprep.subr.bf16.mxu1 %v832_v42 }
 0x10e   :  { %835 = vmatpush1.bf16.msra.mxu1 %v834_v45  ;;  %v250_v47 = vsel %vm248_vm7, %v241_v36, %v243_v46  ;;  %v247_v50 = vpop.permute.xlu1 %246 }
 0x10f   :  { %283 = vmatprep.subr.mxu0 %v250_v47 }
 0x110   :  { %284 = vmatpush1.msra.mxu0 %v249_v49 }
 0x111   :  { %v245_v51 = vpop.permute.xlu0 %244  ;;  %769 = vmatmul.mubr.msk.f32.vlgmr.msra.gmra.mrb[0].mxu0 %vm263_vm8, %v99_v48 }
 0x112   :  { %v252_v52 = vsel %vm248_vm7, %v245_v51, %v247_v50  ;;  %v251_v53 = vsel %vm248_vm7, %v243_v46, %v245_v51  ;;  %629 = vmatprep.mubr.f32.mxu0 %v1202_v7 }
 0x113   :  { %354 = vmatprep.subr.mxu1 %v252_v52 }
 0x114   :  { %355 = vmatpush1.msra.mxu1 %v251_v53 }
 0x115   :  { %770 = vmatmul.mubr.msk.f32.vlgmr.msra.gmra.mrb[0].mxu1 %vm263_vm8, %v99_v48  ;;  %852 = vmatprep.subr.bf16.mxu1 %v1205_v21 }
 0x116   :  { %801 = vmatprep.mubr.msk.f32.mxu1 %vm1206_vm9, %v1202_v7 }
 0x122   :  { %v261_v56 = vpop.permute.xlu0 %260 }
 0x1e4   :  { %v333_v58 = vpop.f32.mrb[0].mxu0 }
 0x1e5   :  { %v335_v60 = vpop.f32.mrb[1].mxu0  ;;  %v334_v9 = vadd.f32 %v333_v58, %v261_v56 }
 0x1e6   :  { %v336_v62 = vadd.f32 %v335_v60, %v261_v56 }
 0x1e7   :  { %v409_v19 = vmax.f32 %v334_v9, 0.0 }
 0x1e8   :  { %v410_v3 = vmax.f32 %v336_v62, 0.0  ;;  %v404_v6 = vpop.f32.mrb[0].mxu1 }
 0x1e9   :  { %v405_v10 = vadd.f32 %v404_v6, %v261_v56  ;;  %v406_v12 = vpop.f32.mrb[1].mxu1  ;;  %v435_v24 = vmul.f32 %v418_v18, %v409_v19 }
 0x1ea   :  { %v407_v13 = vadd.f32 %v406_v12, %v261_v56  ;;  %v436_v14 = vmul.f32 %v422_v63, %v410_v3 }
 0x1eb   :  { %v411_v15 = vmax.f32 %v405_v10, 0.0 }
 0x1ec   :  { %v412_v17 = vmax.f32 %v407_v13, 0.0 }
 0x1ed   :  { %v437_v20 = vmul.f32 %v426_v11, %v411_v15 }
 0x1ee   :  { %v438_v22 = vmul.f32 %v430_v16, %v412_v17 }
 0x1ef   :  { %v965_v23 = vpack.i.bf16 %v437_v20, %v436_v14 }
 0x1f0   :  { %v975_v25 = vpack.i.bf16 %v438_v22, %v435_v24 }
 0x1f1   :  { %966 = vrot.lane.b32.xlu0 %v965_v23, %s1196_s5  ;;  %956 = vrot.lane.b32.xlu1 %v965_v23, %s1195_s14 }
 0x1f5   :  { %976 = vrot.lane.b32.xlu0 %v975_v25, %s1196_s5  ;;  %961 = vrot.lane.b32.xlu1 %v975_v25, %s1195_s14 }
 0x1f9   :  { %986 = vrot.lane.b32.xlu0 %v965_v23, %s1198_s16  ;;  %971 = vrot.lane.b32.xlu1 %v965_v23, %s1197_s15 }
 0x1fd   :  { %996 = vrot.lane.b32.xlu0 %v975_v25, %s1198_s16  ;;  %981 = vrot.lane.b32.xlu1 %v975_v25, %s1197_s15 }
 0x201   :  { %1006 = vrot.lane.b32.xlu0 %v965_v23, %s1200_s17  ;;  %991 = vrot.lane.b32.xlu1 %v965_v23, %s1199_s0 }
 0x205   :  { %1016 = vrot.lane.b32.xlu0 %v975_v25, %s1200_s17  ;;  %1001 = vrot.lane.b32.xlu1 %v975_v25, %s1199_s0 }
 0x209   :  { %544 = vrot.lane.b32.xlu0 %v436_v14, %s1203_s1  ;;  %1011 = vrot.lane.b32.xlu1 %v965_v23, %s1201_s18 }
 0x20d   :  { %542 = vrot.lane.b32.xlu0 %v435_v24, %s1203_s1  ;;  %1021 = vrot.lane.b32.xlu1 %v975_v25, %s1201_s18 }
 0x211   :  { %559 = vperm.xlu0 %954, %v556_v26   ;;  %546 = vrot.lane.b32.xlu1 %v437_v20, %s1203_s1 }
 0x215   :  { %548 = vrot.lane.b32.xlu1 %v438_v22, %s1203_s1 }
 0x263   :  { %v967_v27 = vpop.permute.xlu0 %966  ;;  %v957_v28 = vpop.permute.xlu1 %956 }
 0x264   :  { %v959_v29 = vunpack.i.h.bf16 %v957_v28  ;;  %v958_v30 = vunpack.i.l.bf16 %v957_v28  ;;  %v969_v37 = vunpack.i.h.bf16 %v967_v27  ;;  %v968_v38 = vunpack.i.l.bf16 %v967_v27 }
 0x266   :  { %v453_v31 = vsel %vm115_vm0, %v958_v30, %v959_v29  ;;  %v467_v49 = vsel %vm134_vm1, %v968_v38, %v969_v37 }
 0x267   :  { %v977_v32 = vpop.permute.xlu0 %976  ;;  %v962_v33 = vpop.permute.xlu1 %961  ;;  %v836_v34 = vpack.c.bf16 %v453_v31, %v436_v14 }
 0x268   :  { %v964_v35 = vunpack.i.h.bf16 %v962_v33  ;;  %v963_v36 = vunpack.i.l.bf16 %v962_v33  ;;  %v979_v47 = vunpack.i.h.bf16 %v977_v32  ;;  %v978_v48 = vunpack.i.l.bf16 %v977_v32 }
 0x269   :  { %837 = vmatprep.subr.bf16.mxu0 %v836_v34 }
 0x26a   :  { %v454_v39 = vsel %vm115_vm0, %v959_v29, %v964_v35  ;;  %v452_v40 = vsel %vm115_vm0, %v963_v36, %v958_v30  ;;  %v468_v56 = vsel %vm134_vm1, %v969_v37, %v979_v47  ;;  %v466_v57 = vsel %vm134_vm1, %v978_v48, %v968_v38  ;;  %v439_v48 = vld [vmem:[#allocation10] sm:$0xff] }
 0x26b   :  { %v853_v41 = vpack.c.bf16 %v454_v39, %v437_v20  ;;  %v838_v42 = vpack.c.bf16 %v452_v40, %v435_v24  ;;  %v987_v43 = vpop.permute.xlu0 %986  ;;  %v972_v44 = vpop.permute.xlu1 %971 }
 0x26c   :  { %v974_v45 = vunpack.i.h.bf16 %v972_v44  ;;  %v973_v46 = vunpack.i.l.bf16 %v972_v44  ;;  %v989_v58 = vunpack.i.h.bf16 %v987_v43  ;;  %v988_v59 = vunpack.i.l.bf16 %v987_v43 }
 0x26d   :  { %839 = vmatpush1.bf16.msra.mxu0 %v838_v42  ;;  %854 = vmatpush3.bf16.msra.mxu1 %v853_v41 }
 0x26e   :  { %v481_v50 = vsel %vm153_vm2, %v973_v46, %v974_v45  ;;  %855 = vmatprep.subr.bf16.mxu1 %v1205_v21  ;;  %v495_v11 = vsel %vm172_vm3, %v988_v59, %v989_v58 }
 0x26f   :  { %v997_v51 = vpop.permute.xlu0 %996  ;;  %v982_v52 = vpop.permute.xlu1 %981  ;;  %v840_v53 = vpack.c.bf16 %v481_v50, %v467_v49 }
 0x270   :  { %v984_v54 = vunpack.i.h.bf16 %v982_v52  ;;  %v983_v55 = vunpack.i.l.bf16 %v982_v52  ;;  %v999_v9 = vunpack.i.h.bf16 %v997_v51  ;;  %v998_v10 = vunpack.i.l.bf16 %v997_v51 }
 0x271   :  { %841 = vmatprep.subr.bf16.mxu0 %v840_v53 }
 0x272   :  { %v480_v60 = vsel %vm153_vm2, %v983_v55, %v973_v46  ;;  %v482_v61 = vsel %vm153_vm2, %v974_v45, %v984_v54  ;;  %v494_v17 = vsel %vm172_vm3, %v998_v10, %v988_v59  ;;  %v496_v18 = vsel %vm172_vm3, %v989_v58, %v999_v9 }
 0x273   :  { %v842_v62 = vpack.c.bf16 %v480_v60, %v466_v57  ;;  %v856_v63 = vpack.c.bf16 %v482_v61, %v468_v56  ;;  %v1007_v0 = vpop.permute.xlu0 %1006  ;;  %v992_v3 = vpop.permute.xlu1 %991 }
 0x274   :  { %v994_v6 = vunpack.i.h.bf16 %v992_v3  ;;  %v993_v8 = vunpack.i.l.bf16 %v992_v3  ;;  %v1009_v20 = vunpack.i.h.bf16 %v1007_v0  ;;  %v1008_v22 = vunpack.i.l.bf16 %v1007_v0 }
 0x275   :  { %843 = vmatpush1.bf16.msra.mxu0 %v842_v62  ;;  %857 = vmatpush3.bf16.msra.mxu1 %v856_v63 }
 0x276   :  { %v509_v12 = vsel %vm191_vm4, %v993_v8, %v994_v6  ;;  %858 = vmatprep.subr.bf16.mxu1 %v1205_v21  ;;  %v523_v32 = vsel %vm210_vm5, %v1008_v22, %v1009_v20 }
 0x277   :  { %v1002_v13 = vpop.permute.xlu1 %1001  ;;  %v844_v14 = vpack.c.bf16 %v509_v12, %v495_v11  ;;  %v1017_v19 = vpop.permute.xlu0 %1016 }
 0x278   :  { %v1004_v15 = vunpack.i.h.bf16 %v1002_v13  ;;  %v1003_v16 = vunpack.i.l.bf16 %v1002_v13  ;;  %v1019_v30 = vunpack.i.h.bf16 %v1017_v19  ;;  %v1018_v31 = vunpack.i.l.bf16 %v1017_v19 }
 0x279   :  { %845 = vmatprep.subr.bf16.mxu0 %v844_v14 }
 0x27a   :  { %v508_v23 = vsel %vm191_vm4, %v1003_v16, %v993_v8  ;;  %v510_v24 = vsel %vm191_vm4, %v994_v6, %v1004_v15  ;;  %v522_v39 = vsel %vm210_vm5, %v1018_v31, %v1008_v22  ;;  %v524_v40 = vsel %vm210_vm5, %v1009_v20, %v1019_v30 }
 0x27b   :  { %v846_v25 = vpack.c.bf16 %v508_v23, %v494_v17  ;;  %v859_v26 = vpack.c.bf16 %v510_v24, %v496_v18  ;;  %v1012_v27 = vpop.permute.xlu1 %1011  ;;  %v545_v34 = vpop.permute.xlu0 %544 }
 0x27c   :  { %v1014_v28 = vunpack.i.h.bf16 %v1012_v27  ;;  %v1013_v29 = vunpack.i.l.bf16 %v1012_v27 }
 0x27d   :  { %847 = vmatpush1.bf16.msra.mxu0 %v846_v25  ;;  %860 = vmatpush3.bf16.msra.mxu1 %v859_v26 }
 0x27e   :  { %v537_v33 = vsel %vm229_vm6, %v1013_v29, %v1014_v28  ;;  %861 = vmatprep.subr.bf16.mxu1 %v1205_v21 }
 0x27f   :  { %v1022_v35 = vpop.permute.xlu1 %1021  ;;  %v848_v36 = vpack.c.bf16 %v537_v33, %v523_v32  ;;  %v543_v21 = vpop.permute.xlu0 %542 }
 0x280   :  { %v1024_v37 = vunpack.i.h.bf16 %v1022_v35  ;;  %v1023_v38 = vunpack.i.l.bf16 %v1022_v35  ;;  %v550_v49 = vsel %vm248_vm7, %v543_v21, %v545_v34 }
 0x281   :  { %849 = vmatprep.subr.bf16.mxu0 %v848_v36 }
 0x282   :  { %v536_v41 = vsel %vm229_vm6, %v1023_v38, %v1013_v29  ;;  %v538_v42 = vsel %vm229_vm6, %v1014_v28, %v1024_v37 }
 0x283   :  { %v850_v43 = vpack.c.bf16 %v536_v41, %v522_v39  ;;  %v862_v44 = vpack.c.bf16 %v538_v42, %v524_v40  ;;  %v547_v45 = vpop.permute.xlu1 %546 }
 0x284   :  { %v551_v46 = vsel %vm248_vm7, %v545_v34, %v547_v45 }
 0x285   :  { %851 = vmatpush1.bf16.msra.mxu0 %v850_v43  ;;  %863 = vmatpush3.bf16.msra.mxu1 %v862_v44 }
 0x286   :  { %581 = vmatprep.subr.mxu0 %v551_v46  ;;  %799 = vmatprep.subr.mxu1 %v1202_v7 }
 0x287   :  { %v549_v47 = vpop.permute.xlu1 %548 }
 0x288   :  { %v552_v50 = vsel %vm248_vm7, %v547_v45, %v549_v47 }
 0x289   :  { %582 = vmatpush1.msra.mxu0 %v550_v49  ;;  %800 = vmatpush3.msra.mxu1 %v552_v50 }
 0x28a   :  { %771 = vmatmul.mubr.msk.f32.vlgmr.msra.gmra.mrb[2].mxu0 %vm263_vm8, %v439_v48  ;;  %802 = vmatmul.mubr.msk.f32.vlgmr.msra.gmra.mrb[2].mxu1 %vm263_vm8, %v439_v48 }
 0x290   :  { %v560_v51 = vpop.permute.xlu0 %559 }
 0x35d   :  { %v631_v52 = vpop.f32.mrb[2].mxu0  ;;  %v702_v53 = vpop.f32.mrb[2].mxu1 }
 0x35e   :  { %v632_v54 = vadd.f32 %v631_v52, %v560_v51  ;;  %v633_v55 = vpop.f32.mrb[3].mxu0  ;;  %v803_v56 = vpop.f32.mrb[3].mxu1  ;;  %v703_v7 = vadd.f32 %v702_v53, %v560_v51 }
 0x35f   :  { %v634_v57 = vadd.f32 %v633_v55, %v560_v51 }
 0x360   :  { %709 = vrot.lane.b32.xlu1 %v632_v54, %s1207_s19 }
 0x361   :  { %711 = vrot.lane.b32.xlu0 %v634_v57, %s1207_s19 }
 0x364   :  { %713 = vrot.lane.b32.xlu1 %v703_v7, %s1207_s19 }
 0x3d2   :  { %v710_v58 = vpop.permute.xlu1 %709 }
 0x3d3   :  { %v722_v59 = vadd.f32 %v710_v58, %v1323_v4  ;;  %v712_v60 = vpop.permute.xlu0 %711 }
 0x3d4   :  { %v716_v61 = vsel %vm715_vm10, %v710_v58, %v712_v60 }
 0x3d5   :  { %v726_v62 = vmax.f32 %v722_v59, 0.0  ;;  %v723_v63 = vadd.f32 %v716_v61, %v1316_v1 }
 0x3d6   :  { %v714_v0 = vpop.permute.xlu1 %713 }
 0x3d7   :  { %v727_v3 = vmax.f32 %v723_v63, 0.0  ;;  %v717_v6 = vsel %vm715_vm10, %v712_v60, %v714_v0  ;;  %v725_v8 = vadd.f32 %v714_v0, %v1325_v5  ;;  %734 = vrot.lane.b32.xlu0 %v726_v62, %s1203_s1 }
 0x3d8   :  { %v724_v9 = vadd.f32 %v717_v6, %v1318_v2 }
 0x3d9   :  { %736 = vrot.lane.b32.xlu1 %v727_v3, %s1203_s1  ;;  %v729_v11 = vmax.f32 %v725_v8, 0.0 }
 0x3da   :  { %v728_v10 = vmax.f32 %v724_v9, 0.0 }
 0x3dc   :  { %738 = vrot.lane.b32.xlu0 %v728_v10, %s1203_s1 }
 0x3dd   :  { %740 = vrot.lane.b32.xlu1 %v729_v11, %s1203_s1 }
 0x449   :  { %v735_v4 = vpop.permute.xlu0 %734 }
 0x44b   :  { %v737_v12 = vpop.permute.xlu1 %736 }
 0x44c   :  { %v742_v1 = vsel %vm248_vm7, %v735_v4, %v737_v12 }
 0x44d   :  { %748 = vst [vmem:[#allocation13] sm:$0xff] %v742_v1 }
 0x44e   :  { %v739_v5 = vpop.permute.xlu0 %738 }
 0x44f   :  { %v743_v13 = vsel %vm248_vm7, %v737_v12, %v739_v5  ;;  %v741_v14 = vpop.permute.xlu1 %740 }
 0x450   :  { %749 = vst [vmem:[#allocation13 + $0x8] sm:$0xff] %v743_v13  ;;  %v744_v2 = vsel %vm248_vm7, %v739_v5, %v741_v14 }
 0x451   :  { %750 = vst [vmem:[#allocation13 + $0x10] sm:$0xff] %v744_v2 }
 0x452   :  { %1168 = shalt.err (!%p1165_p10)
}
 0x453   :  { %s1169_s27 = scalar_lea.hbm %s1478_s6, 384 }
 0x454   :  { %p1170_p11 = scmp.ne.s32.totalorder %s1478_s6, %s1169_s27  ;;  %p1173_p12 = scmp.lt.u32.totalorder %s1169_s27, %s1478_s6 }
 0x456   :  { %p1175_p13 = pnand %p1173_p12, %p1170_p11 }
 0x458   :  { %1178 = shalt.err (!%p1175_p13)
}
 0x459   :  { %760 = dma.vmem_to_hbm [thread:$0]  %s758_s21, 384, %s1478_s6, [#allocation4]  }
 0x45a   :  { %1187 = dma.done.wait [#allocation4], 384  }
 0x45b   :  { %1188 = vsyncadd [#allocation4], 4294966912 }
 0x45c   :  { %764 = vsyncpa [#allocation3], 1 }
 0x45d   :  { %765 = vsyncpa [#allocation6], 1 }
 0x45e   :  { %766 = vsyncpa [#allocation9], 1 }
 0x45f   :  { %767 = vsyncpa [#allocation12], 1 }
 0x460   :  { %768 = vsyncpa [#allocation4], 1 }

</bundles_post_ra>
